<compile_context>
chip_gen: v7x
topology: tpu7x:2x2x1
jax: 0.10.0
libtpu: 0.0.40
codegen_flags: <defaults>
</compile_context>

<pallas_src>
import functools

import jax
import jax.numpy as jnp
from jax.experimental import pallas as pl
from jax.experimental.pallas import tpu as pltpu

EPS = 1e-5  # PyTorch BatchNorm3d default eps
_VMEM_BUDGET = 16 * 1024 * 1024   # conservative per-pallas_call working set
_VMEM_LIMIT = 32 * 1024 * 1024    # requested scoped-VMEM limit (all chips OK)


def _round_up(x, m):
    return (x + m - 1) // m * m


def _choose_tp(s_pad, ktc_pad, cout, target_tp):
    """Largest multiple of 128 that divides s_pad, <= target_tp, fits VMEM."""
    for k in range(min(target_tp, s_pad) // 128, 0, -1):
        tp = 128 * k
        if s_pad % tp:
            continue
        # double-buffered in/out blocks per pallas_call (bytes)
        need_k1 = (2 * ktc_pad * tp * 2          # patches tile (bf16)
                   + 2 * cout * ktc_pad * 2      # fused weights (bf16)
                   + 2 * cout * tp * 2           # pw out (bf16)
                   + 4 * cout * 4 * 2)           # sum/ssq outs (f32)
        need_k2 = (2 * cout * tp * 2             # pw in (bf16)
                   + 2 * cout * tp * 4           # y out (f32)
                   + 4 * cout * 4)               # scale/shift (f32)
        if max(need_k1, need_k2) <= _VMEM_BUDGET:
            return tp
    return 128


def _matmul_stats_kernel(p_ref, w_ref, pw_ref, sum_ref, ssq_ref,
                         *, tp, tiles_per_sample, s_real, s_pad):
    # Fused depthwise+pointwise conv: one bf16 MXU matmul, f32 accumulate.
    pw = jnp.dot(w_ref[...], p_ref[...],
                 preferred_element_type=jnp.float32)            # (Cout, TP)
    pw_ref[...] = pw.astype(pw_ref.dtype)                       # bf16 intermediate

    # Per-tile BatchNorm partial statistics (per output channel).
    if s_pad != s_real:
        # exclude per-sample zero-padded tail columns from the batch stats;
        # each tile lies inside exactly one sample.
        off = (pl.program_id(0) % tiles_per_sample) * tp
        col = off + jax.lax.broadcasted_iota(jnp.int32, pw.shape, 1)
        pw = jnp.where(col < s_real, pw, 0.0)
    sum_ref[...] = jnp.sum(pw, axis=1, keepdims=True)[None]         # (1,Cout,1)
    ssq_ref[...] = jnp.sum(pw * pw, axis=1, keepdims=True)[None]    # (1,Cout,1)


def _bn_relu_kernel(pw_ref, scale_ref, shift_ref, y_ref):
    # y = relu((pw - mean) * rsqrt(var+eps) * gamma + beta), pre-folded into
    # per-channel scale/shift.  Reads bf16 pw, writes f32 final layout tile.
    y = pw_ref[...].astype(jnp.float32) * scale_ref[...] + shift_ref[...]
    y_ref[...] = jnp.maximum(y, 0.0)[None]                       # (1, Cout, TP)


def depth_conv_layer(x, w_dw, b_dw, w_pw, gamma, beta,
                     *, kernel_size=3, stride=2, padding=1, tile_p=2048):
    """x: (N, Cin, D, H, W) float32. Returns (N, Cout, OD, OH, OW) float32."""
    del b_dw  # exactly cancelled by training-mode BatchNorm mean subtraction
    N, Cin, D, H, W = x.shape
    Cout = w_pw.shape[0]
    K = kernel_size
    OD = (D + 2 * padding - K) // stride + 1
    OH = (H + 2 * padding - K) // stride + 1
    OW = (W + 2 * padding - K) // stride + 1
    KT = K * K * K
    KTC = KT * Cin
    S = OD * OH * OW          # per-sample output spatial size
    P = N * S                 # real output column count

    # --- glue: bf16 zero-pad + im2col into per-sample lane-dense layout ---
    xb = x.astype(jnp.bfloat16)
    xp = jnp.pad(xb, ((0, 0), (0, 0),
                      (padding, padding), (padding, padding), (padding, padding)))
    taps = []
    for kd in range(K):
        for kh in range(K):
            for kw in range(K):
                taps.append(xp[:, :,
                               kd:kd + stride * (OD - 1) + 1:stride,
                               kh:kh + stride * (OH - 1) + 1:stride,
                               kw:kw + stride * (OW - 1) + 1:stride])
    patches = jnp.stack(taps, axis=0)                 # (KT, N, Cin, OD, OH, OW)
    patches = patches.transpose(0, 2, 1, 3, 4, 5).reshape(KTC, N, S)

    # --- tiling: pad contraction dim and per-sample spatial dim ---
    KTC_pad = _round_up(KTC, 128)         # clean bf16 sublane pack / MXU K pass
    S_pad = _round_up(S, 128)             # per-sample lane padding
    TP = _choose_tp(S_pad, KTC_pad, Cout, tile_p)
    tps = S_pad // TP                     # tiles per sample
    NT = N * tps                          # grid size (>= 2 for v7x megacore)
    P_pad = N * S_pad

    patches = jnp.pad(patches, ((0, KTC_pad - KTC), (0, 0), (0, S_pad - S)))
    patches = patches.reshape(KTC_pad, P_pad)

    # --- glue: fuse depthwise & pointwise weights into one matmul operand ---
    wdw2 = w_dw.reshape(Cin, KT).astype(jnp.float32)              # (Cin, KT)
    wpw2 = w_pw.reshape(Cout, Cin).astype(jnp.float32)            # (Cout, Cin)
    w_fused = (wpw2[:, None, :] * wdw2.T[None, :, :]).reshape(Cout, KTC)
    w_fused = jnp.pad(w_fused, ((0, 0), (0, KTC_pad - KTC))).astype(jnp.bfloat16)

    kernel1 = functools.partial(_matmul_stats_kernel, tp=TP,
                                tiles_per_sample=tps, s_real=S, s_pad=S_pad)

    pw, psum, pssq = pl.pallas_call(
        kernel1,
        out_shape=(jax.ShapeDtypeStruct((Cout, P_pad), jnp.bfloat16),
                   jax.ShapeDtypeStruct((NT, Cout, 1), jnp.float32),
                   jax.ShapeDtypeStruct((NT, Cout, 1), jnp.float32)),
        grid=(NT,),
        in_specs=[
            pl.BlockSpec((KTC_pad, TP), lambda i: (0, i)),     # patches tile
            pl.BlockSpec((Cout, KTC_pad), lambda i: (0, 0)),   # fused W (resident)
        ],
        out_specs=(
            pl.BlockSpec((Cout, TP), lambda i: (0, i)),        # pw tile (bf16)
            pl.BlockSpec((1, Cout, 1), lambda i: (i, 0, 0)),   # per-tile sum
            pl.BlockSpec((1, Cout, 1), lambda i: (i, 0, 0)),   # per-tile sum sq
        ),
        compiler_params=pltpu.CompilerParams(
            dimension_semantics=("parallel",),
            vmem_limit_bytes=_VMEM_LIMIT),
    )(patches, w_fused)

    # --- tiny cross-tile combine (glue on (Cout,) vectors, f32) ---
    tot = jnp.sum(psum[:, :, 0], axis=0)                        # (Cout,)
    tot2 = jnp.sum(pssq[:, :, 0], axis=0)                       # (Cout,)
    mean = tot / P
    var = jnp.maximum(tot2 / P - mean * mean, 0.0)              # biased batch var
    scale = (gamma.astype(jnp.float32) * jax.lax.rsqrt(var + EPS)).reshape(Cout, 1)
    shift = beta.astype(jnp.float32).reshape(Cout, 1) - mean.reshape(Cout, 1) * scale

    # --- BN + ReLU, writing the final (N, Cout, S_pad) layout directly ---
    y = pl.pallas_call(
        _bn_relu_kernel,
        out_shape=jax.ShapeDtypeStruct((N, Cout, S_pad), jnp.float32),
        grid=(NT,),
        in_specs=[
            pl.BlockSpec((Cout, TP), lambda i: (0, i)),
            pl.BlockSpec((Cout, 1), lambda i: (0, 0)),          # scale (resident)
            pl.BlockSpec((Cout, 1), lambda i: (0, 0)),          # shift (resident)
        ],
        out_specs=pl.BlockSpec((1, Cout, TP),
                               lambda i: (i // tps, 0, i % tps)),
        compiler_params=pltpu.CompilerParams(
            dimension_semantics=("parallel",),
            vmem_limit_bytes=_VMEM_LIMIT),
    )(pw, scale, shift)

    # --- trailing glue is now slice + metadata-only reshape (no transpose) ---
    y = y[:, :, :S].reshape(N, Cout, OD, OH, OW)
    return y


if __name__ == "__main__":
    key = jax.random.PRNGKey(0)
    k_x, k_wdw, k_bdw, k_wpw = jax.random.split(key, 4)

    N, Cin, Cout = 2, 4, 8
    D = H = W = 16
    x = jax.random.normal(k_x, (N, Cin, D, H, W), dtype=jnp.float32)

    # deterministic synthetic parameters (shapes match nn.Conv3d / BatchNorm3d)
    w_dw = 0.1 * jax.random.normal(k_wdw, (Cin, 1, 3, 3, 3), dtype=jnp.float32)
    b_dw = 0.1 * jax.random.normal(k_bdw, (Cin,), dtype=jnp.float32)
    w_pw = 0.1 * jax.random.normal(k_wpw, (Cout, Cin, 1, 1, 1), dtype=jnp.float32)
    gamma = jnp.ones((Cout,), dtype=jnp.float32)   # BatchNorm3d default init
    beta = jnp.zeros((Cout,), dtype=jnp.float32)

    y = depth_conv_layer(x, w_dw, b_dw, w_pw, gamma, beta)
    y = jax.block_until_ready(y)
    assert y.shape == (N, Cout, 8, 8, 8), y.shape
    print("KERNEL_OK")
</pallas_src>

<mosaic_0001>
module attributes {stable_mosaic.version = 11 : i64} {
  func.func @_matmul_stats_kernel(%arg0: i32, %arg1: memref<128x512xbf16, #tpu.memory_space<vmem>>, %arg2: memref<8x128xbf16, #tpu.memory_space<vmem>>, %arg3: memref<8x512xbf16, #tpu.memory_space<vmem>>, %arg4: memref<1x8x1xf32, #tpu.memory_space<vmem>>, %arg5: memref<1x8x1xf32, #tpu.memory_space<vmem>>) attributes {dimension_semantics = [#tpu.dimension_semantics<parallel>], iteration_bounds = array<i64: 2>, scalar_prefetch = 0 : i64, scratch_operands = 0 : i64, tpu.core_type = #tpu.core_type<tc>, window_params = [{transform_indices = @transform_0, window_bounds = array<i64: 128, 512>}, {pipeline_mode = #tpu.pipeline_mode<synchronous>, transform_indices = @transform_1, window_bounds = array<i64: 8, 128>}, {transform_indices = @transform_2, window_bounds = array<i64: 8, 512>}, {transform_indices = @transform_3, window_bounds = array<i64: 1, 8, 1>}, {transform_indices = @transform_4, window_bounds = array<i64: 1, 8, 1>}]} {
    %c0 = arith.constant 0 : index
    %c0_0 = arith.constant 0 : index
    %0 = vector.load %arg2[%c0, %c0_0] : memref<8x128xbf16, #tpu.memory_space<vmem>>, vector<8x128xbf16>
    %c0_1 = arith.constant 0 : index
    %c0_2 = arith.constant 0 : index
    %1 = vector.load %arg1[%c0_1, %c0_2] : memref<128x512xbf16, #tpu.memory_space<vmem>>, vector<128x512xbf16>
    %cst = arith.constant dense<0.000000e+00> : vector<8x512xf32>
    %2 = tpu.matmul %0, %1, %cst {dimension_numbers = #tpu.dot_dimension_numbers<[1], [0], [0], [1], [0, 0, 1, 1], [], []>} : vector<8x128xbf16>, vector<128x512xbf16>, vector<8x512xf32> -> vector<8x512xf32>
    %3 = arith.truncf %2 : vector<8x512xf32> to vector<8x512xbf16>
    %c0_3 = arith.constant 0 : index
    %c0_4 = arith.constant 0 : index
    %4 = vector.load %arg3[%c0_3, %c0_4] : memref<8x512xbf16, #tpu.memory_space<vmem>>, vector<8x512xbf16>
    tpu.vector_store %arg3[%c0_3, %c0_4], %3 {strides = array<i32>} : memref<8x512xbf16, #tpu.memory_space<vmem>>, vector<8x512xbf16>,
    %cst_5 = arith.constant dense<0.000000e+00> : vector<8xf32>
    %5 = vector.multi_reduction <add>, %2, %cst_5 [1] : vector<8x512xf32> to vector<8xf32>
    %6 = vector.shape_cast %5 : vector<8xf32> to vector<8x1xf32>
    %7 = vector.shape_cast %6 : vector<8x1xf32> to vector<1x8x1xf32>
    %c0_6 = arith.constant 0 : index
    %c0_7 = arith.constant 0 : index
    %c0_8 = arith.constant 0 : index
    %8 = vector.load %arg4[%c0_6, %c0_7, %c0_8] : memref<1x8x1xf32, #tpu.memory_space<vmem>>, vector<1x8x1xf32>
    tpu.vector_store %arg4[%c0_6, %c0_7, %c0_8], %7 {strides = array<i32>} : memref<1x8x1xf32, #tpu.memory_space<vmem>>, vector<1x8x1xf32>,
    %9 = arith.mulf %2, %2 : vector<8x512xf32>
    %cst_9 = arith.constant dense<0.000000e+00> : vector<8xf32>
    %10 = vector.multi_reduction <add>, %9, %cst_9 [1] : vector<8x512xf32> to vector<8xf32>
    %11 = vector.shape_cast %10 : vector<8xf32> to vector<8x1xf32>
    %12 = vector.shape_cast %11 : vector<8x1xf32> to vector<1x8x1xf32>
    %c0_10 = arith.constant 0 : index
    %c0_11 = arith.constant 0 : index
    %c0_12 = arith.constant 0 : index
    %13 = vector.load %arg5[%c0_10, %c0_11, %c0_12] : memref<1x8x1xf32, #tpu.memory_space<vmem>>, vector<1x8x1xf32>
    tpu.vector_store %arg5[%c0_10, %c0_11, %c0_12], %12 {strides = array<i32>} : memref<1x8x1xf32, #tpu.memory_space<vmem>>, vector<1x8x1xf32>,
    return
  }
  func.func @transform_0(%arg0: i32) -> (i32, i32) {
    %c0_i32 = arith.constant 0 : i32
    %c0_i32_0 = arith.constant 0 : i32
    return %c0_i32, %arg0 : i32, i32
  }
  func.func @transform_1(%arg0: i32) -> (i32, i32) {
    %c0_i32 = arith.constant 0 : i32
    %c0_i32_0 = arith.constant 0 : i32
    %c0_i32_1 = arith.constant 0 : i32
    return %c0_i32, %c0_i32_0 : i32, i32
  }
  func.func @transform_2(%arg0: i32) -> (i32, i32) {
    %c0_i32 = arith.constant 0 : i32
    %c0_i32_0 = arith.constant 0 : i32
    return %c0_i32, %arg0 : i32, i32
  }
  func.func @transform_3(%arg0: i32) -> (i32, i32, i32) {
    %c0_i32 = arith.constant 0 : i32
    %c0_i32_0 = arith.constant 0 : i32
    %c0_i32_1 = arith.constant 0 : i32
    return %arg0, %c0_i32, %c0_i32_0 : i32, i32, i32
  }
  func.func @transform_4(%arg0: i32) -> (i32, i32, i32) {
    %c0_i32 = arith.constant 0 : i32
    %c0_i32_0 = arith.constant 0 : i32
    %c0_i32_1 = arith.constant 0 : i32
    return %arg0, %c0_i32, %c0_i32_0 : i32, i32, i32
  }
}

</mosaic_0001>

<bundles_post_ra>
// kernel: tpu_custom_call.1
= control target key start
LH: loop header
LB: loop body
LE: loop exit
PB: predicated region body
PF: predicated region fallthrough
CT: control target
= control target key end

     0   :  { %10 = vsyncpa [#allocation3], 0  ;;  %s1280_s0 = inlined_call_operand.hbm [shape: bf16[128,1024], index: 0, kind: input, shape index: {}]   ;;  %s1281_s1 = inlined_call_operand.hbm [shape: bf16[8,128], index: 1, kind: input, shape index: {}]   ;;  %s1282_s2 = inlined_call_operand.hbm [shape: bf16[8,1024], index: 2, kind: output, shape index: {0}]   ;;  %s1283_s3 = inlined_call_operand.vmem [shape: f32[2,8,1], index: 3, kind: output, shape index: {1}]   ;;  %s1284_s4 = inlined_call_operand.vmem [shape: f32[2,8,1], index: 4, kind: output, shape index: {2}]  }
   0x1   :  { %12 = vsyncpa [#allocation3 + $0x1], 0 }
   0x2   :  { %13 = vsyncpa [#allocation6], 0 }
   0x3   :  { %14 = vsyncpa [#allocation4], 0 }
   0x4   :  { %16 = vsyncpa [#allocation4 + $0x1], 0  ;;  %s1047_s15 = smov 0   ;;  %s1049_s16 = smov 0  }
   0x5   :  { %s1051_s17 = smov 0   ;;  %s1053_s18 = smov 0  }
   0x6 LB: > { %s1068_s19 = sadd.s32 4294967295, %s1013_s18   ;;  %s720_s20 = sadd.s32 4294967294, %s1013_s18   ;;  %s1013_s18 = sphi %s1053_s18, %s1309_s18   ;;  %s1009_s17 = sphi %s1051_s17, %s1308_s17   ;;  %s1005_s16 = sphi %s1049_s16, %s1307_s16   ;;  %s1001_s15 = sphi %s1047_s15, %s1306_s15  }
   0x7   : > { %s1072_s21 = sadd.s32 1, %s1013_s18   ;;  %s29_s22 = sadd.s32 1, %s1009_s17 }
   0x8   : > { %s26_s23 = ssub.s32 %s1013_s18, %s1072_s21  ;;  %p36_p0 = scmp.ne.s32.totalorder %s1009_s17, %s1005_s16 }
   0x9   : > { %p27_p1 = scmp.eq.s32.totalorder %s26_s23, 0  ;;  %p37_p2 = scmp.eq.s32.totalorder %s1013_s18, 0 }
   0xa   : > { %p42_p3 = scmp.ne.s32.totalorder %s1005_s16, %s1001_s15  ;;  %p1285_p4 = scmp.eq.s32.totalorder %s1068_s19, 0 }
   0xb   : > { %s1084_s24 = scalar_select %p27_p1, %s1009_s17, %s29_s22  }
   0xc   : > { %p1086_p5 = por %p37_p2, %p36_p0  ;;  %p1092_p6 = por %p1285_p4, %p42_p3 }
   0xd   : > { %p87_p7 = scmp.eq.s32.totalorder %s1068_s19, 1  ;;  %p93_p8 = scmp.eq.s32.totalorder %s720_s20, 1 }
   0xe   : > { %s1291_s26 = scalar_select %p1092_p6, 1, 0 }
   0xf   : > { %p721_p9 = scmp.ge.s32.totalorder %s1013_s18, 1  ;;  %p152_p10 = scmp.lt.s32.totalorder %s1013_s18, 3 }
  0x10   : > { %p1099_p11 = por %p87_p7, %p36_p0  ;;  %p1103_p12 = por %p93_p8, %p42_p3 }
  0x11   : > { %p1107_p13 = pnand %p721_p9, %p152_p10  ;;  %s1015_s30 = smov [#allocation5]  }
  0x12   : > { %s1292_s27 = scalar_select %p1099_p11, 1, 0 }
  0x13   : > { %s1293_s28 = scalar_select %p1103_p12, 1, 0 }
  0x14   : > { %s1294_s29 = scalar_select %p1107_p13, 1, 0 }
  0x15   : > { %p784_p2 = pneg %p1107_p13  ;;  %s165_s5 = sshll.u32 %s1015_s30, 4  ;;  %s166_s5 = int_to_ptr.vmem [resolvable:$true] %s165_s5 }
  0x16   : > { %p797_p4 = scmp.lt.s32.totalorder %s1013_s18, 2  ;;  %p1295_p0 = scmp.eq.s32.totalorder %s1068_s19, 0 }
  0x17   : > { %s176_s7 = sand.u32 1, %s1009_s17   ;;  %s885_s12 = scalar_lea.hbm %s1281_s1, 64 }
  0x18   : > { %p1117_p7 = pnand %p784_p2, %p1295_p0  ;;  %p1124_p3 = pnand %p797_p4, %p1086_p5 }
  0x19   : > { %s724_s9 = sshll.u32 %s176_s7, 8  ;;  %p886_p8 = scmp.ne.s32.totalorder %s1281_s1, %s885_s12 }
  0x1a   : > { %s1297_s8 = scalar_select %p1124_p3, 1, 0 }
  0x1b   : > { %p887_p9 = pneg %p1117_p7  ;;  %p892_p4 = scmp.lt.u32.totalorder %s885_s12, %s1281_s1 }
  0x1d   : > { %p888_p10 = pnand %p887_p9, %p886_p8 }
  0x1f   : > { %p889_p2 = pneg %p888_p10 }
  0x21   : > { %p894_p5 = pnand %p892_p4, %p889_p2 }
  0x23   : > { %897 = shalt.err (!%p894_p5)
}
  0x24   : > { %s898_s23 = scalar_lea.vmem %s166_s5, 64  ;;  %p906_p11 = scmp.lt.s32.totalorder %s166_s5, %s166_s5 }
  0x25   : > { %p899_p0 = scmp.ne.s32.totalorder %s166_s5, %s898_s23  ;;  %p907_p6 = scmp.lt.s32.totalorder %s898_s23, %s898_s23 }
  0x27   : > { %p901_p1 = pnand %p899_p0, %p887_p9  ;;  %p908_p13 = por %p907_p6, %p906_p11 }
  0x29   : > { %p902_p12 = pneg %p901_p1 }
  0x2b   : > { %p909_p3 = pnand %p908_p13, %p902_p12 }
  0x2d   : > { %912 = shalt.err (!%p909_p3)
}
  0x2e   : > { %787 = dma.hbm_to_vmem [thread:$0]  (!%p1117_p7), %s1281_s1, 64, %s166_s5, [#allocation6]  }
  0x2f   : > { %s772_s10 = sshll.u32 %s1013_s18, 8  ;;  %s180_s11 = scalar_lea.vmem [#allocation2], %s724_s9 }
  0x30   : > { %s187_s12 = sshll.u32 %s180_s11, 4  ;;  %s1148_s20 = scalar_lea.hbm %s1280_s0, %s772_s10  ;;  %s1150_s12 = int_to_ptr.vmem [resolvable:$true] %s187_s12 }
  0x31   : > { %s1152_s6 = scalar_lea.sflag [#allocation3], %s176_s7  ;;  %s913_s22 = scalar_lea.hbm %s1148_s20, 4096 }
  0x32   : > { %p914_p6 = scmp.ne.s32.totalorder %s1148_s20, %s913_s22  ;;  %p1298_p11 = scmp.ne.s32.totalorder %s1297_s8, 0 }
  0x33   : > { %s918_s23 = scalar_lea.hbm %s1280_s0, 8192  ;;  %p919_p7 = scmp.lt.u32.totalorder %s1148_s20, %s1280_s0 }
  0x34   : > { %p915_p12 = pneg %p1298_p11  ;;  %p920_p3 = scmp.lt.u32.totalorder %s918_s23, %s913_s22 }
  0x35   : > { %p922_p9 = scmp.lt.u32.totalorder %s913_s22, %s1148_s20 }
  0x36   : > { %p916_p13 = pnand %p915_p12, %p914_p6  ;;  %p921_p8 = por %p920_p3, %p919_p7 }
  0x38   : > { %p917_p1 = pneg %p916_p13  ;;  %p923_p10 = por %p922_p9, %p921_p8 }
  0x3a   : > { %p924_p2 = pnand %p923_p10, %p917_p1 }
  0x3c   : > { %927 = shalt.err (!%p924_p2)
}
  0x3d   : > { %s928_s7 = scalar_lea.vmem %s1150_s12, 4096  ;;  %s1016_s10 = smov [#allocation2]  }
  0x3e   : > { %p929_p4 = scmp.ne.s32.totalorder %s1150_s12, %s928_s7  ;;  %s933_s11 = sshll.u32 %s1016_s10, 4  ;;  %s934_s11 = int_to_ptr.vmem [resolvable:$false] %s933_s11 }
  0x3f   : > { %s935_s13 = scalar_lea.vmem %s934_s11, 8192  ;;  %p936_p6 = scmp.lt.s32.totalorder %s1150_s12, %s934_s11 }
  0x40   : > { %p931_p5 = pnand %p929_p4, %p915_p12  ;;  %p937_p13 = scmp.lt.s32.totalorder %s935_s13, %s928_s7 }
  0x42   : > { %p932_p0 = pneg %p931_p5  ;;  %p938_p7 = por %p937_p13, %p936_p6 }
  0x44   : > { %p939_p3 = pnand %p938_p7, %p932_p0 }
  0x46   : > { %942 = shalt.err (!%p939_p3)
}
  0x47   : > { %s1017_s14 = smov 512   ;;  %s1018_s22 = smov 256  }
  0x48   : > { %s1019_s5 = smov 16   ;;  %p1299_p12 = scmp.ne.s32.totalorder %s1294_s29, 0 }
  0x49   : > { %791 = dma.hbm_to_vmem [thread:$0]  (!%p1298_p11), %s1148_s20, 4096, %s1150_s12, %s1152_s6, %s1017_s14, %s1018_s22, %s1019_s5  }
  0x4a   : > { %199 = sbr.rel (%p1299_p12) target bundleno = 485 (0x1e5), region = 28  ;;  %s1183_s9 = sand.u32 (!%p1299_p12), 1, %s1005_s16  }
  0x4b   : > { %s728_s23 = sshll.u32 (!%p1299_p12), %s1183_s9, 8  ;;  %s202_s25 = scalar_lea.sflag (!%p1299_p12), [#allocation3], %s1183_s9 }
  0x4c   : > { %s1187_s30 = scalar_lea.vmem (!%p1299_p12), [#allocation2], %s728_s23  ;;  %p1300_p1 = scmp.ne.s32.totalorder (!%p1299_p12), %s1291_s26, 0 }
  0x51   : > { %988 = dma.done.wait (%p1300_p1), %s202_s25, 4096  }
  0x52   : > { %990 = vsyncadd (%p1300_p1), %s202_s25, 4294963200  ;;  %p1301_p11 = scmp.eq.s32.totalorder %s1068_s19, 0 }
  0x54   : > { %992 = dma.done.wait (%p1301_p11), [#allocation6], 64   ;;  %p1302_p8 = pmov %p1301_p11 }
  0x55   : > { %v1020_v0 = vmov 0   ;;  %v837_v1 = vld [vmem:[%s1187_s30 + $0x4] ss:$16 sps:$4 sm:$0xff]   ;;  %v839_v2 = vld [vmem:[%s1187_s30 + $0xc] ss:$16 sps:$4 sm:$0xff]   ;;  %s730_s26 = sshll.u32 %s1183_s9, 4 }
  0x56   : > { %994 = vsyncadd (%p1302_p8), [#allocation6], 4294967232  ;;  %478 = vmatprep.mubr.bf16.mxu0 %v1020_v0  ;;  %519 = vmatprep.mubr.bf16.mxu1 %v1020_v0  ;;  %v841_v3 = vld [vmem:[%s1187_s30] ss:$16 sps:$4 sm:$0xff]   ;;  %v842_v4 = vld [vmem:[%s1187_s30 + $0x8] ss:$16 sps:$4 sm:$0xff]  }
  0x57   : > { %446 = vmatprep.subr.bf16.mxu0 %v837_v1  ;;  %487 = vmatprep.subr.bf16.mxu1 %v839_v2  ;;  %v843_v5 = vld [vmem:[%s1187_s30 + $0x24] ss:$16 sps:$4 sm:$0xff]   ;;  %v845_v6 = vld [vmem:[%s1187_s30 + $0x2c] ss:$16 sps:$4 sm:$0xff]   ;;  %v847_v7 = vld [vmem:[%s1187_s30 + $0x20] ss:$16 sps:$4 sm:$0xff]  }
  0x58   : > { %447 = vmatpush1.bf16.msra.mxu0 %v841_v3  ;;  %488 = vmatpush1.bf16.msra.mxu1 %v842_v4  ;;  %v848_v8 = vld [vmem:[%s1187_s30 + $0x28] ss:$16 sps:$4 sm:$0xff]   ;;  %v849_v9 = vld [vmem:[%s1187_s30 + $0x44] ss:$16 sps:$4 sm:$0xff]   ;;  %v851_v10 = vld [vmem:[%s1187_s30 + $0x4c] ss:$16 sps:$4 sm:$0xff]  }
  0x59   : > { %448 = vmatprep.subr.bf16.mxu0 %v843_v5  ;;  %489 = vmatprep.subr.bf16.mxu1 %v845_v6  ;;  %v853_v11 = vld [vmem:[%s1187_s30 + $0x40] ss:$16 sps:$4 sm:$0xff]   ;;  %v854_v12 = vld [vmem:[%s1187_s30 + $0x48] ss:$16 sps:$4 sm:$0xff]   ;;  %v855_v13 = vld [vmem:[%s1187_s30 + $0x64] ss:$16 sps:$4 sm:$0xff]  }
  0x5a   : > { %v857_v14 = vld [vmem:[%s1187_s30 + $0x6c] ss:$16 sps:$4 sm:$0xff]   ;;  %v859_v15 = vld [vmem:[%s1187_s30 + $0x60] ss:$16 sps:$4 sm:$0xff]   ;;  %v860_v16 = vld [vmem:[%s1187_s30 + $0x68] ss:$16 sps:$4 sm:$0xff]  }
  0x5b   : > { %v861_v17 = vld [vmem:[%s1187_s30 + $0x84] ss:$16 sps:$4 sm:$0xff]   ;;  %v863_v18 = vld [vmem:[%s1187_s30 + $0x8c] ss:$16 sps:$4 sm:$0xff]   ;;  %v865_v19 = vld [vmem:[%s1187_s30 + $0x80] ss:$16 sps:$4 sm:$0xff]  }
  0x5c   : > { %449 = vmatpush1.bf16.msra.mxu0 %v847_v7  ;;  %490 = vmatpush1.bf16.msra.mxu1 %v848_v8  ;;  %v866_v20 = vld [vmem:[%s1187_s30 + $0x88] ss:$16 sps:$4 sm:$0xff]   ;;  %v867_v21 = vld [vmem:[%s1187_s30 + $0xa4] ss:$16 sps:$4 sm:$0xff]   ;;  %v869_v22 = vld [vmem:[%s1187_s30 + $0xac] ss:$16 sps:$4 sm:$0xff]  }
  0x5d   : > { %450 = vmatprep.subr.bf16.mxu0 %v849_v9  ;;  %491 = vmatprep.subr.bf16.mxu1 %v851_v10  ;;  %v871_v23 = vld [vmem:[%s1187_s30 + $0xa0] ss:$16 sps:$4 sm:$0xff]   ;;  %v872_v24 = vld [vmem:[%s1187_s30 + $0xa8] ss:$16 sps:$4 sm:$0xff]   ;;  %v873_v25 = vld [vmem:[%s1187_s30 + $0xc4] ss:$16 sps:$4 sm:$0xff]  }
  0x5e   : > { %v875_v26 = vld [vmem:[%s1187_s30 + $0xcc] ss:$16 sps:$4 sm:$0xff]   ;;  %v877_v27 = vld [vmem:[%s1187_s30 + $0xc0] ss:$16 sps:$4 sm:$0xff]   ;;  %v878_v28 = vld [vmem:[%s1187_s30 + $0xc8] ss:$16 sps:$4 sm:$0xff]  }
  0x5f   : > { %v879_v29 = vld [vmem:[%s1187_s30 + $0xe4] ss:$16 sps:$4 sm:$0xff]   ;;  %v881_v30 = vld [vmem:[%s1187_s30 + $0xec] ss:$16 sps:$4 sm:$0xff]   ;;  %v883_v31 = vld [vmem:[%s1187_s30 + $0xe0] ss:$16 sps:$4 sm:$0xff]  }
  0x60   : > { %451 = vmatpush1.bf16.msra.mxu0 %v853_v11  ;;  %492 = vmatpush1.bf16.msra.mxu1 %v854_v12  ;;  %v884_v32 = vld [vmem:[%s1187_s30 + $0xe8] ss:$16 sps:$4 sm:$0xff]   ;;  %v253_v33 = vld [vmem:[#allocation5] sm:$0xf]  ;;  %s229_s29 = scalar_lea.vmem [#allocation7], %s730_s26  ;;  %s775_s8 = sshll.u32 %s1068_s19, 8 }
  0x61   : > { %452 = vmatprep.subr.bf16.mxu0 %v855_v13  ;;  %493 = vmatprep.subr.bf16.mxu1 %v857_v14  ;;  %s586_s12 = sshll.u32 %s229_s29, 4  ;;  %s1234_s7 = scalar_lea.hbm %s1282_s2, %s775_s8  ;;  %s587_s12 = int_to_ptr.vmem [resolvable:$true] %s586_s12 }
  0x62   : > { %s564_s10 = scalar_lea.sflag [#allocation4], %s1183_s9  ;;  %s943_s11 = scalar_lea.vmem %s587_s12, 256 }
  0x63   : > { %p944_p9 = scmp.ne.s32.totalorder %s587_s12, %s943_s11  ;;  %p1303_p10 = scmp.ne.s32.totalorder %s1292_s27, 0 }
  0x64   : > { %453 = vmatpush1.bf16.msra.mxu0 %v859_v15  ;;  %494 = vmatpush1.bf16.msra.mxu1 %v860_v16  ;;  %s1021_s13 = smov [#allocation7]  }
  0x65   : > { %454 = vmatprep.subr.bf16.mxu0 %v861_v17  ;;  %495 = vmatprep.subr.bf16.mxu1 %v863_v18  ;;  %p945_p2 = pnand %p944_p9, %p1303_p10  ;;  %s947_s14 = sshll.u32 %s1021_s13, 4  ;;  %s948_s14 = int_to_ptr.vmem [resolvable:$false] %s947_s14 }
  0x66   : > { %s949_s22 = scalar_lea.vmem %s948_s14, 512  ;;  %p950_p5 = scmp.lt.s32.totalorder %s587_s12, %s948_s14 }
  0x67   : > { %p946_p4 = pneg %p945_p2  ;;  %p951_p0 = scmp.lt.s32.totalorder %s949_s22, %s943_s11 }
  0x68   : > { %455 = vmatpush1.bf16.msra.mxu0 %v865_v19  ;;  %496 = vmatpush1.bf16.msra.mxu1 %v866_v20 }
  0x69   : > { %456 = vmatprep.subr.bf16.mxu0 %v867_v21  ;;  %497 = vmatprep.subr.bf16.mxu1 %v869_v22  ;;  %p952_p6 = por %p951_p0, %p950_p5 }
  0x6b   : > { %p953_p13 = pnand %p952_p6, %p946_p4 }
  0x6c   : > { %457 = vmatpush1.bf16.msra.mxu0 %v871_v23  ;;  %498 = vmatpush1.bf16.msra.mxu1 %v872_v24 }
  0x6d   : > { %458 = vmatprep.subr.bf16.mxu0 %v873_v25  ;;  %499 = vmatprep.subr.bf16.mxu1 %v875_v26 }
  0x70   : > { %459 = vmatpush1.bf16.msra.mxu0 %v877_v27  ;;  %500 = vmatpush1.bf16.msra.mxu1 %v878_v28 }
  0x71   : > { %460 = vmatprep.subr.bf16.mxu0 %v879_v29  ;;  %501 = vmatprep.subr.bf16.mxu1 %v881_v30 }
  0x74   : > { %461 = vmatpush1.bf16.msra.mxu0 %v883_v31  ;;  %502 = vmatpush1.bf16.msra.mxu1 %v884_v32 }
  0x77   : > { %479 = vmatmul.mubr.bf16.vlgmr.msra.gmra.mrb[0].mxu0 %v253_v33  ;;  %520 = vmatmul.mubr.bf16.vlgmr.msra.gmra.mrb[0].mxu1 %v253_v33 }
 0x14a   : > { %v480_v34 = vpop.f32.mrb[0].mxu0  ;;  %v521_v35 = vpop.f32.mrb[0].mxu1 }
 0x14b   : > { %v553_v36 = vmul.f32 %v480_v34, %v480_v34  ;;  %v555_v37 = vmul.f32 %v521_v35, %v521_v35  ;;  %v482_v38 = vpop.f32.mrb[1].mxu0  ;;  %v523_v39 = vpop.f32.mrb[1].mxu1 }
 0x14c   : > { %v773_v40 = vpack.c.bf16 %v482_v38, %v480_v34  ;;  %v546_v41 = vadd.f32 %v482_v38, %v480_v34  ;;  %v554_v42 = vmul.f32 %v482_v38, %v482_v38  ;;  %v774_v43 = vpack.c.bf16 %v523_v39, %v521_v35  ;;  %v484_v44 = vpop.f32.mrb[2].mxu0  ;;  %v525_v45 = vpop.f32.mrb[2].mxu1 }
 0x14d   : > { %v485_v46 = vpop.f32.mrb[3].mxu0  ;;  %v526_v47 = vpop.f32.mrb[3].mxu1  ;;  %v556_v51 = vmul.f32 %v523_v39, %v523_v39 }
 0x14e   : > { %544 = vst [vmem:[%s229_s29] sm:$0xff] %v773_v40  ;;  %545 = vst [vmem:[%s229_s29 + $0x8] sm:$0xff] %v774_v43  ;;  %v547_v48 = vadd.f32 %v546_v41, %v521_v35  ;;  %v557_v49 = vadd.f32 %v554_v42, %v553_v36 }
 0x150   : > { %v548_v50 = vadd.f32 %v547_v48, %v523_v39  ;;  %v558_v52 = vadd.f32 %v557_v49, %v555_v37 }
 0x152   : > { %549 = vadd.xlane.f32.xlu0 %v548_v50  ;;  %v559_v53 = vadd.f32 %v558_v52, %v556_v51 }
 0x156   : > { %560 = vadd.xlane.f32.xlu0 %v559_v53 }
 0x157   : > { %956 = shalt.err (!%p953_p13)
}
 0x158   : > { %s957_s5 = scalar_lea.hbm %s1234_s7, 256  ;;  %s961_s25 = scalar_lea.hbm %s1282_s2, 512 }
 0x159   : > { %p958_p7 = scmp.ne.s32.totalorder %s1234_s7, %s957_s5  ;;  %p962_p1 = scmp.lt.u32.totalorder %s1234_s7, %s1282_s2 }
 0x15a   : > { %p963_p11 = scmp.lt.u32.totalorder %s961_s25, %s957_s5  ;;  %p965_p9 = scmp.lt.u32.totalorder %s957_s5, %s1234_s7 }
 0x15b   : > { %p959_p3 = pnand %p958_p7, %p1303_p10 }
 0x15c   : > { %p964_p8 = por %p963_p11, %p962_p1 }
 0x15d   : > { %p960_p12 = pneg %p959_p3 }
 0x15e   : > { %p966_p2 = por %p965_p9, %p964_p8 }
 0x160   : > { %p967_p4 = pnand %p966_p2, %p960_p12 }
 0x162   : > { %970 = shalt.err (!%p967_p4)
}
 0x163   : > { %782 = dma.vmem_to_hbm [thread:$0]  (%p1303_p10), %s587_s12, 256, %s1234_s7, %s564_s10   ;;  %vm551_vm0 = vcmask 7168  }
 0x164   : > { %p244_p5 = scmp.lt.s32.totalorder %s1068_s19, 1 }
 0x166   : > { %s1311_s19 = smov (!%p244_p5, %s1068_s19), 1 }
 0x167   : > { %s731_s29 = sshll.u32 %s1311_s19, 3 }
 0x168   : > { %s247_s6 = scalar_lea.vmem %s1283_s3, %s731_s29  ;;  %s251_s14 = scalar_lea.vmem %s1284_s4, %s731_s29 }
 0x1df   : > { %v550_v54 = vpop.xlane.xlu0 %549 }
 0x1e0   : > { %552 = vst.msk [vmem:[%s247_s6] sm:$0xff] %vm551_vm0, %v550_v54 }
 0x1e3   : > { %v561_v55 = vpop.xlane.xlu0 %560 }
 0x1e4   : > { %562 = vst.msk [vmem:[%s251_s14] sm:$0xff] %vm551_vm0, %v561_v55 }
 0x1e5 PF: > { %s604_s27 = sand.u32 1, %s1001_s15   ;;  %p1304_p10 = scmp.ne.s32.totalorder %s1293_s28, 0 }
 0x1e6   : > { %p1305_p0 = scmp.ge.s32.totalorder %s1013_s18, 2  ;;  %s605_s19 = scalar_lea.sflag [#allocation4], %s604_s27 }
 0x1e8   : > { %p793_p6 = pnand %p1305_p0, %p1304_p10 }
 0x1ea   : > { %996 = dma.done.wait (!%p793_p6), %s605_s19, 256  }
 0x1eb   : > { %998 = vsyncadd (!%p793_p6), %s605_s19, 4294967040  ;;  %p19_p13 = scmp.ge.s32.totalorder %s1072_s21, 4   ;;  %s1306_s15 = smov %s1005_s16 }
 0x1ec   : > { %s1307_s16 = smov %s1009_s17  ;;  %s1308_s17 = smov %s1084_s24 }
 0x1ed   : > { %s1309_s18 = smov %s1072_s21  ;;  %21 = sbr.rel (!%p19_p13) target bundleno = 6 (0x6), region = 101 }
 0x1f4   :  { %624 = vsyncpa [#allocation3], 1 }
 0x1f5   :  { %626 = vsyncpa [#allocation3 + $0x1], 1 }
 0x1f6   :  { %627 = vsyncpa [#allocation6], 1 }
 0x1f7   :  { %628 = vsyncpa [#allocation4], 1 }
 0x1f8   :  { %630 = vsyncpa [#allocation4 + $0x1], 1 }

</bundles_post_ra>
